<compile_context>
chip_gen: v5e
topology: v5e:2x2
jax: 0.10.0
libtpu: 0.0.40
codegen_flags: <defaults>
</compile_context>

<pallas_src>
import functools
import math

import jax
import jax.numpy as jnp
from jax.experimental import pallas as pl
from jax.experimental.pallas import tpu as pltpu


# ----------------------------------------------------------------------------
# Generation-aware sizing
# ----------------------------------------------------------------------------

def _tpu_budgets():
    """Returns (per-block tile budget bytes, vmem_limit_bytes)."""
    try:
        kind = jax.devices()[0].device_kind.lower()
    except Exception:
        kind = ""
    if "v7" in kind:
        # v7x: 64 MiB physical VMEM per TC -> keep the scoped limit well under.
        return 4 << 20, 48 << 20
    if "v5" in kind or "v6" in kind:
        # v5e/v6e: 128 MiB physical VMEM -> bigger streaming blocks.
        return 6 << 20, 80 << 20
    # Unknown generation: conservative numbers that fit every current TPU.
    return 4 << 20, 48 << 20


def _round_up(v, m):
    return -(-v // m) * m


def _choose_col_tile(d_cols, itemsize, tile_budget, min_rows=64):
    """Feature tile: full D, or a multiple of 128 leaving room for >=min_rows rows."""
    if d_cols <= 128 or d_cols % 128 != 0:
        return d_cols                         # full dim is always a legal block
    max_cols = max((tile_budget // (min_rows * itemsize)) // 128 * 128, 128)
    return min(d_cols, max_cols)


def _choose_row_tile(n_rows, row_bytes, tile_budget, ensure_multi_step=True):
    """Row tile: multiple of 8 (or full n_rows when tiny), sized to the budget."""
    if n_rows <= 8:
        return n_rows                         # full dim is always a legal block
    max_rows = max((tile_budget // max(row_bytes, 1)) // 8 * 8, 8)
    if ensure_multi_step and n_rows >= 16:
        # Cap at ~half the rows so the "parallel" row axis has >= 2 grid steps:
        # v7x megacore sharding + DMA/compute pipeline overlap.
        max_rows = min(max_rows, _round_up((n_rows + 1) // 2, 8))
    return max(min(max_rows, (n_rows // 8) * 8), 8)


def _pack_factor(n, d):
    """Lane-dense packing: fold `pack` consecutive rows into one 128k-lane row."""
    if d % 128 == 0:
        return 1
    pack = 128 // math.gcd(d, 128)
    if pack > 1 and n % pack == 0:
        return pack
    return 1


# ----------------------------------------------------------------------------
# Kernels
# ----------------------------------------------------------------------------

def _actnorm_affine_kernel(x_ref, s_ref, t_ref, z_ref):
    """Streaming affine on one (TILE_N, TILE_D) block: z = x * exp(s) + t."""
    x = x_ref[...]
    es = jnp.exp(s_ref[...].astype(jnp.float32))          # exp always in f32
    t = t_ref[...]
    if x.dtype == jnp.float32:
        z = x * es + t.astype(jnp.float32)
    else:
        # bf16 (or other narrow) inputs: keep the streaming mul-add in the
        # input dtype (bf16 VALU on v6e/v7x); the f32 upcast of the full tile
        # would only double vreg traffic for zero output precision.
        z = x * es.astype(x.dtype) + t.astype(x.dtype)
    z_ref[...] = z.astype(z_ref.dtype)


def _actnorm_stats_kernel(x_ref, s_ref, t_ref, sum_ref, sumsq_ref,
                          *, n_total, tile_n, need_mask):
    """Data-dependent init stats on one feature tile, reduced over batch tiles.

    Accumulates sum / sum-of-squares in VMEM scratch (footprint independent of
    batch size) and finalizes s = -0.5*log(var), t = -mean*exp(s)."""
    k = pl.program_id(1)                                    # batch-tile index

    @pl.when(k == 0)
    def _init():
        sum_ref[...] = jnp.zeros_like(sum_ref)
        sumsq_ref[...] = jnp.zeros_like(sumsq_ref)

    x = x_ref[...].astype(jnp.float32)                      # (TILE_N, TILE_D)
    if need_mask:
        # Ragged last batch block: zero padded rows so they don't pollute sums.
        row = jax.lax.broadcasted_iota(jnp.int32, x.shape, 0) + k * tile_n
        x = jnp.where(row < n_total, x, 0.0)
    sum_ref[...] += jnp.sum(x, axis=0, keepdims=True)
    sumsq_ref[...] += jnp.sum(x * x, axis=0, keepdims=True)

    @pl.when(k == pl.num_programs(1) - 1)
    def _finalize():
        n = jnp.float32(n_total)
        mean = sum_ref[...] / n
        # Unbiased variance (torch.std's N-1 denominator).  One-pass form is
        # accurate to float rounding for ActNorm-scale data; -0.5*log(var)
        # avoids the extra sqrt.  n == 1 / zero variance -> inf/NaN, matching
        # the PyTorch module.
        var = (sumsq_ref[...] - n * mean * mean) / (n - 1.0)
        s = -0.5 * jnp.log(var)
        s_ref[...] = s
        t_ref[...] = -mean * jnp.exp(s)                     # == -(x*exp(s)).mean


# ----------------------------------------------------------------------------
# Wrappers
# ----------------------------------------------------------------------------

@jax.jit
def actnorm_forward(x, s, t):
    """ActNorm.forward after data-dependent init (plain AffineConstantFlow).

    Returns (z, log_det)."""
    n, d = x.shape
    itemsize = jnp.dtype(x.dtype).itemsize
    tile_budget, vmem_limit = _tpu_budgets()

    # Lane-dense packing: fold consecutive batch rows so the lane width is a
    # multiple of 128 -> full-width vst instead of masked vst.msk.  Pure
    # layout plumbing; s/t are tiled to match.
    pack = _pack_factor(n, d)
    xp = x.reshape(n // pack, d * pack) if pack > 1 else x
    sp = jnp.tile(s, (1, pack)) if pack > 1 else s
    tp = jnp.tile(t, (1, pack)) if pack > 1 else t

    n_rows, d_cols = xp.shape
    tile_d = _choose_col_tile(d_cols, itemsize, tile_budget)
    tile_n = _choose_row_tile(n_rows, tile_d * itemsize, tile_budget,
                              ensure_multi_step=True)
    grid = (pl.cdiv(n_rows, tile_n), pl.cdiv(d_cols, tile_d))

    # NOTE: the constant-index (1, tile_d) s/t blocks are tiny; if a profile
    # ever shows them re-DMA'd per step, move exp(s) into a VMEM scratch
    # filled once or bump the x spec to pipeline_mode=pl.Buffered(3).
    z = pl.pallas_call(
        _actnorm_affine_kernel,
        out_shape=jax.ShapeDtypeStruct((n_rows, d_cols), x.dtype),
        grid_spec=pltpu.PrefetchScalarGridSpec(
            num_scalar_prefetch=0,
            grid=grid,
            in_specs=[
                pl.BlockSpec((tile_n, tile_d), lambda i, j: (i, j)),
                pl.BlockSpec((1, tile_d), lambda i, j: (0, j)),
                pl.BlockSpec((1, tile_d), lambda i, j: (0, j)),
            ],
            out_specs=pl.BlockSpec((tile_n, tile_d), lambda i, j: (i, j)),
        ),
        compiler_params=pltpu.CompilerParams(
            dimension_semantics=("parallel", "parallel"),
            vmem_limit_bytes=vmem_limit,
        ),
    )(xp, sp, tp)

    z = z.reshape(n, d) if pack > 1 else z
    # log_det depends only on s -> computed outside the tiled grid.
    log_det = jnp.sum(s, axis=1)                            # (1,)
    return z, log_det


@jax.jit
def actnorm_forward_init(x):
    """ActNorm.forward on the very first batch (data-dependent init).

    Returns (z, log_det, s, t)."""
    n, d = x.shape
    itemsize = jnp.dtype(x.dtype).itemsize
    tile_budget, vmem_limit = _tpu_budgets()

    # Pass 1: batch-tiled stats reduction (VMEM use independent of batch size).
    tile_d = _choose_col_tile(d, itemsize, tile_budget)
    tile_n = _choose_row_tile(n, tile_d * itemsize, tile_budget,
                              ensure_multi_step=False)
    grid = (pl.cdiv(d, tile_d), pl.cdiv(n, tile_n))
    need_mask = (n % tile_n) != 0

    kernel = functools.partial(_actnorm_stats_kernel,
                               n_total=n, tile_n=tile_n, need_mask=need_mask)

    s, t = pl.pallas_call(
        kernel,
        out_shape=(
            jax.ShapeDtypeStruct((1, d), jnp.float32),
            jax.ShapeDtypeStruct((1, d), jnp.float32),
        ),
        grid_spec=pltpu.PrefetchScalarGridSpec(
            num_scalar_prefetch=0,
            grid=grid,
            in_specs=[pl.BlockSpec((tile_n, tile_d), lambda j, k: (k, j))],
            out_specs=[
                pl.BlockSpec((1, tile_d), lambda j, k: (0, j)),
                pl.BlockSpec((1, tile_d), lambda j, k: (0, j)),
            ],
            scratch_shapes=[
                pltpu.VMEM((1, tile_d), jnp.float32),       # running sum
                pltpu.VMEM((1, tile_d), jnp.float32),       # running sum of squares
            ],
        ),
        compiler_params=pltpu.CompilerParams(
            dimension_semantics=("parallel", "arbitrary"),
            vmem_limit_bytes=vmem_limit,
        ),
    )(x)

    # Pass 2: z via the shared streaming affine kernel (lane-dense, tiled,
    # megacore-sharded -- same path as post-init calls).
    z, log_det = actnorm_forward(x, s, t)
    return z, log_det, s, t


# ----------------------------------------------------------------------------
# Pure-JAX references + demo
# ----------------------------------------------------------------------------

def _reference_init(x):
    n = x.shape[0]
    mean = jnp.mean(x, axis=0, keepdims=True)
    std = jnp.sqrt(jnp.sum((x - mean) ** 2, axis=0, keepdims=True) / (n - 1))
    s = -jnp.log(std)
    es = jnp.exp(s)
    t = -jnp.mean(x * es, axis=0, keepdims=True)
    z = x * es + t
    return z, jnp.sum(s, axis=1), s, t


if __name__ == "__main__":
    key = jax.random.PRNGKey(0)
    batch, dim = 8, 32

    # First batch (the module's randn-initialized s, t are immediately
    # overwritten by the data-dependent init, so they are not inputs here).
    x = jax.random.normal(key, (batch, dim), dtype=jnp.float32)

    z1, ld1, s_param, t_param = actnorm_forward_init(x)
    jax.block_until_ready((z1, ld1, s_param, t_param))

    z_ref, ld_ref, s_ref, t_ref = _reference_init(x)
    assert jnp.allclose(s_param, s_ref, atol=1e-5, rtol=1e-5)
    assert jnp.allclose(t_param, t_ref, atol=1e-5, rtol=1e-5)
    assert jnp.allclose(z1, z_ref, atol=1e-5, rtol=1e-5)
    assert jnp.allclose(ld1, ld_ref, atol=1e-5, rtol=1e-5)

    # Subsequent call: plain affine-constant flow with stored parameters.
    x2 = jax.random.normal(jax.random.PRNGKey(1), (batch, dim), dtype=jnp.float32)
    z2, ld2 = actnorm_forward(x2, s_param, t_param)
    jax.block_until_ready((z2, ld2))

    z2_ref = x2 * jnp.exp(s_param) + t_param
    ld2_ref = jnp.sum(s_param, axis=1)
    assert jnp.allclose(z2, z2_ref, atol=1e-5, rtol=1e-5)
    assert jnp.allclose(ld2, ld2_ref, atol=1e-5, rtol=1e-5)

    print("KERNEL_OK")
</pallas_src>

<mosaic_0001>
module attributes {stable_mosaic.version = 11 : i64} {
  func.func @_actnorm_affine_kernel(%arg0: i32, %arg1: i32, %arg2: memref<2x128xf32, #tpu.memory_space<vmem>>, %arg3: memref<1x128xf32, #tpu.memory_space<vmem>>, %arg4: memref<1x128xf32, #tpu.memory_space<vmem>>, %arg5: memref<2x128xf32, #tpu.memory_space<vmem>>) attributes {dimension_semantics = [#tpu.dimension_semantics<parallel>, #tpu.dimension_semantics<parallel>], iteration_bounds = array<i64: 1, 1>, scalar_prefetch = 0 : i64, scratch_operands = 0 : i64, tpu.core_type = #tpu.core_type<tc>, window_params = [{transform_indices = @transform_0, window_bounds = array<i64: 2, 128>}, {transform_indices = @transform_1, window_bounds = array<i64: 1, 128>}, {transform_indices = @transform_2, window_bounds = array<i64: 1, 128>}, {transform_indices = @transform_3, window_bounds = array<i64: 2, 128>}]} {
    %c0 = arith.constant 0 : index
    %c0_0 = arith.constant 0 : index
    %0 = vector.load %arg2[%c0, %c0_0] : memref<2x128xf32, #tpu.memory_space<vmem>>, vector<2x128xf32>
    %c0_1 = arith.constant 0 : index
    %c0_2 = arith.constant 0 : index
    %1 = vector.load %arg3[%c0_1, %c0_2] : memref<1x128xf32, #tpu.memory_space<vmem>>, vector<1x128xf32>
    %2 = math.exp %1 : vector<1x128xf32>
    %c0_3 = arith.constant 0 : index
    %c0_4 = arith.constant 0 : index
    %3 = vector.load %arg4[%c0_3, %c0_4] : memref<1x128xf32, #tpu.memory_space<vmem>>, vector<1x128xf32>
    %4 = vector.broadcast %2 : vector<1x128xf32> to vector<2x128xf32>
    %5 = arith.mulf %0, %4 : vector<2x128xf32>
    %6 = vector.broadcast %3 : vector<1x128xf32> to vector<2x128xf32>
    %7 = arith.addf %5, %6 : vector<2x128xf32>
    %c0_5 = arith.constant 0 : index
    %c0_6 = arith.constant 0 : index
    %8 = vector.load %arg5[%c0_5, %c0_6] : memref<2x128xf32, #tpu.memory_space<vmem>>, vector<2x128xf32>
    tpu.vector_store %arg5[%c0_5, %c0_6], %7 {strides = array<i32>} : memref<2x128xf32, #tpu.memory_space<vmem>>, vector<2x128xf32>,
    return
  }
  func.func @transform_0(%arg0: i32, %arg1: i32) -> (i32, i32) {
    %c0_i32 = arith.constant 0 : i32
    return %arg0, %arg1 : i32, i32
  }
  func.func @transform_1(%arg0: i32, %arg1: i32) -> (i32, i32) {
    %c0_i32 = arith.constant 0 : i32
    %c0_i32_0 = arith.constant 0 : i32
    return %c0_i32, %arg1 : i32, i32
  }
  func.func @transform_2(%arg0: i32, %arg1: i32) -> (i32, i32) {
    %c0_i32 = arith.constant 0 : i32
    %c0_i32_0 = arith.constant 0 : i32
    return %c0_i32, %arg1 : i32, i32
  }
  func.func @transform_3(%arg0: i32, %arg1: i32) -> (i32, i32) {
    %c0_i32 = arith.constant 0 : i32
    return %arg0, %arg1 : i32, i32
  }
}

</mosaic_0001>

<bundles_post_ra>
// kernel: actnorm_forward.1
= control target key start
LH: loop header
LB: loop body
LE: loop exit
PB: predicated region body
PF: predicated region fallthrough
CT: control target
= control target key end

     0   :  { %s67_s1 = inlined_call_operand.vmem [shape: f32[1,128], index: 1, kind: input, shape index: {}]   ;;  %s68_s2 = inlined_call_operand.vmem [shape: f32[1,128], index: 2, kind: input, shape index: {}]   ;;  %s69_s0 = inlined_call_operand.vmem [shape: f32[2,128], index: 0, kind: input, shape index: {}]   ;;  %s70_s3 = inlined_call_operand.vmem [shape: f32[2,128], index: 3, kind: output, shape index: {}]  }
   0x1   :  { %v15_v0 = vld [vmem:[%s67_s1] sm:$0x1] }
   0x2   :  { %v16_v1 = vmul.f32 1.442695, %v15_v0  ;;  %v14_v3 = vld [vmem:[%s69_s0] sm:$0x3] }
   0x3   :  { %v32_v5 = vld [vmem:[%s68_s2] ss:$0 sm:$0xff] }
   0x4   :  { %33 = vpow2.f32 %v16_v1 }
   0xa   :  { %v34_v2 = vpop.eup %33 }
   0xb   :  { %v20_v4 = vperm.slane %v34_v2, 0 }
   0xd   :  { %v22_v6 = vmul.f32 %v20_v4, %v14_v3 }
   0xf   :  { %v26_v7 = vadd.f32 %v32_v5, %v22_v6 }
  0x11   :  { %27 = vst [vmem:[%s70_s3] sm:$0x3] %v26_v7 }

</bundles_post_ra>
